<compile_context>
chip_gen: v5e
topology: v5e:2x2
jax: 0.10.0
libtpu: 0.0.40
codegen_flags: <defaults>
</compile_context>

<pallas_src>
import math
import functools

import jax
import jax.numpy as jnp
from jax.experimental import pallas as pl
from jax.experimental.pallas import tpu as pltpu


_VMEM_LIMIT = 64 * 1024 * 1024   # fits v5e/v6e (128 MiB) and v7x (64 MiB)


def _tile(dim, target):
    """Pick a bounded tile size and the padded dimension it evenly divides."""
    if dim <= target:
        return dim, dim
    return target, pl.cdiv(dim, target) * target


def _pad_to(x, shape):
    pads = tuple((0, t - s) for s, t in zip(x.shape, shape))
    if any(p[1] for p in pads):
        return jnp.pad(x, pads)
    return x


# ---------------------------------------------------------------------------
# Tiled matmul (optional fused residual-add epilogue, single-K fast path)
# ---------------------------------------------------------------------------

def _mm_acc_kernel(x_ref, w_ref, o_ref, acc_ref):
    @pl.when(pl.program_id(2) == 0)
    def _():
        acc_ref[...] = jnp.zeros_like(acc_ref)

    acc_ref[...] += jnp.dot(x_ref[...], w_ref[...],
                            preferred_element_type=jnp.float32)

    @pl.when(pl.program_id(2) == pl.num_programs(2) - 1)
    def _():
        o_ref[...] = acc_ref[...].astype(o_ref.dtype)


def _mm_acc_res_kernel(x_ref, w_ref, r_ref, o_ref, acc_ref):
    @pl.when(pl.program_id(2) == 0)
    def _():
        acc_ref[...] = jnp.zeros_like(acc_ref)

    acc_ref[...] += jnp.dot(x_ref[...], w_ref[...],
                            preferred_element_type=jnp.float32)

    @pl.when(pl.program_id(2) == pl.num_programs(2) - 1)
    def _():
        o_ref[...] = (acc_ref[...] + r_ref[...].astype(jnp.float32)
                      ).astype(o_ref.dtype)


def _mm_1k_kernel(x_ref, w_ref, o_ref):
    o_ref[...] = jnp.dot(x_ref[...], w_ref[...],
                         preferred_element_type=jnp.float32).astype(o_ref.dtype)


def _mm_1k_res_kernel(x_ref, w_ref, r_ref, o_ref):
    acc = jnp.dot(x_ref[...], w_ref[...], preferred_element_type=jnp.float32)
    o_ref[...] = (acc + r_ref[...].astype(jnp.float32)).astype(o_ref.dtype)


def matmul(x, w, residual=None, *, out_dtype=jnp.bfloat16,
           tm=512, tn=512, tk=1024):
    """x: (M, K) bf16 @ w: (K, N) bf16 -> (M, N) out_dtype, optional +residual."""
    if x.dtype != jnp.bfloat16:
        x = x.astype(jnp.bfloat16)
    M, K = x.shape
    K2, N = w.shape
    assert K == K2
    tm, Mp = _tile(M, tm)
    tn, Np = _tile(N, tn)
    tk, Kp = _tile(K, tk)
    xp = _pad_to(x, (Mp, Kp))
    wp = _pad_to(w, (Kp, Np))
    nk = Kp // tk
    out_shape = jax.ShapeDtypeStruct((Mp, Np), out_dtype)

    if nk == 1:
        # Single K step: no accumulator scratch, no init/finalize.
        grid = (Mp // tm, Np // tn)
        x_spec = pl.BlockSpec((tm, tk), lambda i, j: (i, 0))
        w_spec = pl.BlockSpec((tk, tn), lambda i, j: (0, j))
        o_spec = pl.BlockSpec((tm, tn), lambda i, j: (i, j))
        cp = pltpu.CompilerParams(dimension_semantics=("parallel", "parallel"),
                                  vmem_limit_bytes=_VMEM_LIMIT)
        if residual is None:
            out = pl.pallas_call(
                _mm_1k_kernel, out_shape=out_shape, grid=grid,
                in_specs=[x_spec, w_spec], out_specs=o_spec,
                compiler_params=cp)(xp, wp)
        else:
            rp = _pad_to(residual, (Mp, Np))
            out = pl.pallas_call(
                _mm_1k_res_kernel, out_shape=out_shape, grid=grid,
                in_specs=[x_spec, w_spec, o_spec], out_specs=o_spec,
                compiler_params=cp)(xp, wp, rp)
    else:
        grid = (Mp // tm, Np // tn, nk)
        x_spec = pl.BlockSpec((tm, tk), lambda i, j, k: (i, k))
        w_spec = pl.BlockSpec((tk, tn), lambda i, j, k: (k, j))
        o_spec = pl.BlockSpec((tm, tn), lambda i, j, k: (i, j))
        cp = pltpu.CompilerParams(
            dimension_semantics=("parallel", "parallel", "arbitrary"),
            vmem_limit_bytes=_VMEM_LIMIT)
        scratch = [pltpu.VMEM((tm, tn), jnp.float32)]
        if residual is None:
            out = pl.pallas_call(
                _mm_acc_kernel, out_shape=out_shape, grid=grid,
                in_specs=[x_spec, w_spec], out_specs=o_spec,
                scratch_shapes=scratch, compiler_params=cp)(xp, wp)
        else:
            rp = _pad_to(residual, (Mp, Np))
            out = pl.pallas_call(
                _mm_acc_res_kernel, out_shape=out_shape, grid=grid,
                in_specs=[x_spec, w_spec, o_spec], out_specs=o_spec,
                scratch_shapes=scratch, compiler_params=cp)(xp, wp, rp)

    if (Mp, Np) != (M, N):
        out = out[:M, :N]
    return out


def linear(x, w, *, out_dtype=jnp.bfloat16):
    """x: (..., K) @ w: (K, N) -> (..., N)  (matches torch.matmul(x, weight))."""
    lead = x.shape[:-1]
    out = matmul(x.reshape(-1, x.shape[-1]), w, out_dtype=out_dtype)
    return out.reshape(*lead, w.shape[-1])


# ---------------------------------------------------------------------------
# RMSNorm (row-tiled, f32 statistics, bf16 out)
# ---------------------------------------------------------------------------

def _rmsnorm_kernel(x_ref, g_ref, o_ref, *, eps):
    # TODO(synk): could be fused into the consumer matmul's x-tile prologue.
    x = x_ref[...].astype(jnp.float32)
    ms = jnp.mean(x * x, axis=-1, keepdims=True)
    o_ref[...] = (x * jax.lax.rsqrt(ms + eps) * g_ref[...]).astype(o_ref.dtype)


def rmsnorm(x, g, eps=1e-5, *, tr=256):
    lead = x.shape[:-1]
    d = x.shape[-1]
    x2d = x.reshape(-1, d)
    M = x2d.shape[0]
    tr, Mp = _tile(M, tr)
    xp = _pad_to(x2d, (Mp, d))
    out = pl.pallas_call(
        functools.partial(_rmsnorm_kernel, eps=eps),
        out_shape=jax.ShapeDtypeStruct((Mp, d), jnp.bfloat16),
        grid=(Mp // tr,),
        in_specs=[pl.BlockSpec((tr, d), lambda i: (i, 0)),
                  pl.BlockSpec((1, d), lambda i: (0, 0))],
        out_specs=pl.BlockSpec((tr, d), lambda i: (i, 0)),
        compiler_params=pltpu.CompilerParams(
            dimension_semantics=("parallel",), vmem_limit_bytes=_VMEM_LIMIT),
    )(xp, g.reshape(1, d))
    if Mp != M:
        out = out[:M]
    return out.reshape(*lead, d)


# ---------------------------------------------------------------------------
# Flash-style causal multi-head attention with fused RoPE
#   q, k, v stay in merged (B, S, D) layout; heads are static column slices.
# ---------------------------------------------------------------------------

def _rope_rotate(x, cos, sin_signed):
    """Interleaved even/odd pair rotation: out = x*cos + swap(x)*sin_signed."""
    C = x.shape[-1]
    lane = jax.lax.broadcasted_iota(jnp.int32, x.shape, 1)
    fwd = pltpu.roll(x, C - 1, 1)                 # fwd[i] = x[i + 1]
    bwd = pltpu.roll(x, 1, 1)                     # bwd[i] = x[i - 1]
    swapped = jnp.where(lane % 2 == 0, fwd, bwd)
    return x * cos + swapped * sin_signed


def _attn_kernel(q_ref, k_ref, v_ref, cq_ref, sq_ref, ck_ref, sk_ref, o_ref,
                 m_ref, l_ref, acc_ref, *, scale, tq, tk, n_head, hd):
    qi = pl.program_id(1)
    ki = pl.program_id(2)

    @pl.when(ki == 0)
    def _():
        m_ref[...] = jnp.full_like(m_ref, -1e30)
        l_ref[...] = jnp.zeros_like(l_ref)
        acc_ref[...] = jnp.zeros_like(acc_ref)

    # Compute only KV tiles that intersect the causal (past) region.  The
    # matching index_map clamp means skipped iterations also issue no new DMA.
    @pl.when(ki * tk <= qi * tq + (tq - 1))
    def _():
        q = q_ref[0]                               # (tq, D) bf16
        k = k_ref[0]                               # (tk, D) bf16
        v = v_ref[0]                               # (tk, D) bf16
        cq = cq_ref[...]
        sq = sq_ref[...]
        ck = ck_ref[...]
        sk = sk_ref[...]
        row = qi * tq + jax.lax.broadcasted_iota(jnp.int32, (tq, tk), 0)
        col = ki * tk + jax.lax.broadcasted_iota(jnp.int32, (tq, tk), 1)
        causal = row >= col

        for h in range(n_head):
            sl = slice(h * hd, (h + 1) * hd)
            qh = _rope_rotate(q[:, sl].astype(jnp.float32), cq, sq
                              ).astype(jnp.bfloat16)
            kh = _rope_rotate(k[:, sl].astype(jnp.float32), ck, sk
                              ).astype(jnp.bfloat16)
            s = jax.lax.dot_general(qh, kh, (((1,), (1,)), ((), ())),
                                    preferred_element_type=jnp.float32) * scale
            s = jnp.where(causal, s, -1e30)

            m_prev = m_ref[h]
            m_new = jnp.maximum(m_prev, jnp.max(s, axis=-1, keepdims=True))
            alpha = jnp.exp(m_prev - m_new)
            p = jnp.exp(s - m_new)
            l_ref[h] = alpha * l_ref[h] + jnp.sum(p, axis=-1, keepdims=True)
            acc_ref[h] = alpha * acc_ref[h] + jnp.dot(
                p.astype(jnp.bfloat16), v[:, sl],
                preferred_element_type=jnp.float32)
            m_ref[h] = m_new

    @pl.when(ki == pl.num_programs(2) - 1)
    def _():
        parts = []
        for h in range(n_head):
            inv = pl.reciprocal(l_ref[h], approx=False)
            parts.append(acc_ref[h] * inv)
        # Single lane-dense store of all heads in merged (tq, D) layout.
        o_ref[0] = jnp.concatenate(parts, axis=-1).astype(o_ref.dtype)


def causal_attention_rope(q, k, v, cosf, sinf, n_head, *, ts=256):
    """q, k, v: (B, S, D) bf16; cosf/sinf: (S, head_dim) f32 -> (B, S, D) bf16."""
    B, S, D = q.shape
    hd = D // n_head
    scale = float(hd) ** (-0.5)
    tq, Sp = _tile(S, ts)
    tk = tq
    qp = _pad_to(q, (B, Sp, D))
    kp = _pad_to(k, (B, Sp, D))
    vp = _pad_to(v, (B, Sp, D))
    cosp = _pad_to(cosf, (Sp, hd))
    sinp = _pad_to(sinf, (Sp, hd))

    def kv_block(qi, ki):
        # Clamp so causally-skipped iterations reuse the resident block (no DMA).
        return jnp.minimum(ki, (qi * tq + tq - 1) // tk)

    q_spec = pl.BlockSpec((1, tq, D), lambda b, qi, ki: (b, qi, 0))
    kv_spec = pl.BlockSpec((1, tk, D), lambda b, qi, ki: (b, kv_block(qi, ki), 0))
    cq_spec = pl.BlockSpec((tq, hd), lambda b, qi, ki: (qi, 0))
    ck_spec = pl.BlockSpec((tk, hd), lambda b, qi, ki: (kv_block(qi, ki), 0))
    o_spec = pl.BlockSpec((1, tq, D), lambda b, qi, ki: (b, qi, 0))

    out = pl.pallas_call(
        functools.partial(_attn_kernel, scale=scale, tq=tq, tk=tk,
                          n_head=n_head, hd=hd),
        out_shape=jax.ShapeDtypeStruct((B, Sp, D), jnp.bfloat16),
        grid=(B, Sp // tq, Sp // tk),
        in_specs=[q_spec, kv_spec, kv_spec, cq_spec, cq_spec, ck_spec, ck_spec],
        out_specs=o_spec,
        scratch_shapes=[pltpu.VMEM((n_head, tq, 1), jnp.float32),
                        pltpu.VMEM((n_head, tq, 1), jnp.float32),
                        pltpu.VMEM((n_head, tq, hd), jnp.float32)],
        compiler_params=pltpu.CompilerParams(
            dimension_semantics=("parallel", "parallel", "arbitrary"),
            vmem_limit_bytes=_VMEM_LIMIT),
    )(qp, kp, vp, cosp, sinp, cosp, sinp)
    if Sp != S:
        out = out[:, :S]
    return out


# ---------------------------------------------------------------------------
# Fused SwiGLU FFN (tiled over rows and d_ff, fused residual epilogue)
# ---------------------------------------------------------------------------

def _ffn_kernel(x_ref, w1_ref, w3_ref, w2_ref, r_ref, o_ref, acc_ref):
    f = pl.program_id(1)

    @pl.when(f == 0)
    def _():
        acc_ref[...] = jnp.zeros_like(acc_ref)

    xb = x_ref[...]                                      # bf16, resident over f
    h1 = jnp.dot(xb, w1_ref[...], preferred_element_type=jnp.float32)
    h3 = jnp.dot(xb, w3_ref[...], preferred_element_type=jnp.float32)
    g = (h1 * (1.0 / (1.0 + jnp.exp(-h1)))) * h3         # SiLU gate in f32
    acc_ref[...] += jnp.dot(g.astype(jnp.bfloat16), w2_ref[...],
                            preferred_element_type=jnp.float32)

    @pl.when(f == pl.num_programs(1) - 1)
    def _():
        o_ref[...] = (acc_ref[...] + r_ref[...].astype(jnp.float32)
                      ).astype(o_ref.dtype)


def swiglu_ffn(x, w1, w3, w2, residual, *, tm=256, tf=256):
    # TODO(synk): for very large d_model on v7x (64 MiB VMEM) also tile the
    # d_model axis of the x / w blocks instead of keeping it whole.
    lead = x.shape[:-1]
    d = x.shape[-1]
    d_ff = w1.shape[-1]
    x2d = x.reshape(-1, d)
    r2d = residual.reshape(-1, d)
    M = x2d.shape[0]
    tm, Mp = _tile(M, tm)
    tf, Fp = _tile(d_ff, tf)
    xp = _pad_to(x2d, (Mp, d))
    rp = _pad_to(r2d, (Mp, d))
    w1p = _pad_to(w1, (d, Fp))
    w3p = _pad_to(w3, (d, Fp))
    w2p = _pad_to(w2, (Fp, d))

    out = pl.pallas_call(
        _ffn_kernel,
        out_shape=jax.ShapeDtypeStruct((Mp, d), jnp.bfloat16),
        grid=(Mp // tm, Fp // tf),
        in_specs=[pl.BlockSpec((tm, d), lambda i, f: (i, 0)),
                  pl.BlockSpec((d, tf), lambda i, f: (0, f)),
                  pl.BlockSpec((d, tf), lambda i, f: (0, f)),
                  pl.BlockSpec((tf, d), lambda i, f: (f, 0)),
                  pl.BlockSpec((tm, d), lambda i, f: (i, 0))],
        out_specs=pl.BlockSpec((tm, d), lambda i, f: (i, 0)),
        scratch_shapes=[pltpu.VMEM((tm, d), jnp.float32)],
        compiler_params=pltpu.CompilerParams(
            dimension_semantics=("parallel", "arbitrary"),
            vmem_limit_bytes=_VMEM_LIMIT),
    )(xp, w1p, w3p, w2p, rp)
    if Mp != M:
        out = out[:M]
    return out.reshape(*lead, d)


# ---------------------------------------------------------------------------
# Transformer orchestration (plain-JAX glue: embedding gather, pad/slice only)
# ---------------------------------------------------------------------------

def transformer_block(x, lp, rope_cos, rope_sin, n_head):
    B, S, D = x.shape

    nx = rmsnorm(x, lp["ln1"])
    # Three separate projections: same HBM traffic as a fused QKV matmul
    # (x tiles are re-read per N block either way) but no slice copies, and
    # q/k/v land directly in the (B, S, D) layout the attention kernel wants.
    q = linear(nx, lp["wq"])
    k = linear(nx, lp["wk"])
    v = linear(nx, lp["wv"])

    ctx = causal_attention_rope(q, k, v, rope_cos[:S], rope_sin[:S], n_head)

    # output projection with fused residual add
    x = matmul(ctx.reshape(-1, D), lp["output_proj"],
               residual=x.reshape(-1, D)).reshape(B, S, D)

    nx = rmsnorm(x, lp["ln2"])
    return swiglu_ffn(nx, lp["w1"], lp["w3"], lp["w2"], residual=x)


def transformer_forward(params, token_ids, n_head):
    # TODO(synk): embedding gather kept in plain JAX (data-dependent row gather).
    x = params["embed"][token_ids].astype(jnp.bfloat16)        # (B, S, d_model)
    for lp in params["layers"]:
        x = transformer_block(x, lp, params["rope_cos"], params["rope_sin"],
                              n_head)
    x = rmsnorm(x, params["ln_final"])
    B, S, D = x.shape
    vocab = params["lm_head"].shape[-1]
    logits = matmul(x.reshape(-1, D), params["lm_head"], out_dtype=jnp.float32)
    return logits.reshape(B, S, vocab)


# ---------------------------------------------------------------------------
# Deterministic parameter init (mirrors the PyTorch __init__ shapes / std)
# ---------------------------------------------------------------------------

def _trunc_normal(key, shape, std):
    return std * jax.random.truncated_normal(key, -3.0, 3.0, shape, jnp.float32)


def _linear_init(key, fan_in, fan_out):
    std = math.sqrt(2.0 / (fan_in + fan_out))
    # weights stored in bf16 (MXU inputs); accumulation stays f32 in-kernel
    return _trunc_normal(key, (fan_in, fan_out), std).astype(jnp.bfloat16)


def init_params(key, vocab_size, context_length, d_model, d_ff, theta,
                num_layers, num_head):
    keys = jax.random.split(key, 2 + 7 * num_layers)
    it = iter(keys)

    params = {
        "embed": _trunc_normal(next(it), (vocab_size, d_model), 1.0),
        "ln_final": jnp.ones((d_model,), jnp.float32),
        "lm_head": _linear_init(next(it), d_model, vocab_size),
        "layers": [],
    }

    # Per-head RoPE tables: interleaved cos and sign-baked sin, (S, head_dim).
    head_dim = d_model // num_head
    pos = jnp.arange(context_length, dtype=jnp.float32)[:, None]
    div = jnp.exp(jnp.arange(0, head_dim, 2, dtype=jnp.float32)
                  * (-math.log(theta) / head_dim))
    angle = pos * div                                         # (S, hd//2)
    cos_i = jnp.repeat(jnp.cos(angle), 2, axis=-1)            # (S, hd)
    sin_i = jnp.repeat(jnp.sin(angle), 2, axis=-1)            # (S, hd)
    sign = jnp.tile(jnp.array([-1.0, 1.0], jnp.float32), head_dim // 2)
    params["rope_cos"] = cos_i
    params["rope_sin"] = sin_i * sign

    for _ in range(num_layers):
        lp = {
            "wq": _linear_init(next(it), d_model, d_model),
            "wk": _linear_init(next(it), d_model, d_model),
            "wv": _linear_init(next(it), d_model, d_model),
            "output_proj": _linear_init(next(it), d_model, d_model),
            "w1": _linear_init(next(it), d_model, d_ff),
            "w3": _linear_init(next(it), d_model, d_ff),
            "w2": _linear_init(next(it), d_ff, d_model),
            "ln1": jnp.ones((d_model,), jnp.float32),
            "ln2": jnp.ones((d_model,), jnp.float32),
        }
        params["layers"].append(lp)
    return params


# ---------------------------------------------------------------------------

if __name__ == "__main__":
    # Small config. Note: the reference module's RoPE broadcast requires
    # batch == num_head (token_positions expanded to (B, S)); positions are
    # identical across batch so the math matches standard RoPE.
    vocab_size = 64
    context_length = 8
    d_model = 32
    d_ff = 64
    theta = 10000.0
    num_layers = 2
    num_head = 2
    batch = 2
    seq = context_length

    key = jax.random.PRNGKey(0)
    k_param, k_ids = jax.random.split(key)
    params = init_params(k_param, vocab_size, context_length, d_model, d_ff,
                         theta, num_layers, num_head)
    token_ids = jax.random.randint(k_ids, (batch, seq), 0, vocab_size, jnp.int32)

    logits = transformer_forward(params, token_ids, num_head)
    logits = jax.block_until_ready(logits)
    assert logits.shape == (batch, seq, vocab_size)
    assert logits.dtype == jnp.float32
    assert bool(jnp.all(jnp.isfinite(logits)))
    print("KERNEL_OK")
</pallas_src>

<mosaic_0001>
module attributes {stable_mosaic.version = 11 : i64} {
  func.func @_rmsnorm_kernel(%arg0: i32, %arg1: memref<16x32xbf16, #tpu.memory_space<vmem>>, %arg2: memref<1x32xf32, #tpu.memory_space<vmem>>, %arg3: memref<16x32xbf16, #tpu.memory_space<vmem>>) attributes {dimension_semantics = [#tpu.dimension_semantics<parallel>], iteration_bounds = array<i64: 1>, scalar_prefetch = 0 : i64, scratch_operands = 0 : i64, tpu.core_type = #tpu.core_type<tc>, window_params = [{transform_indices = @transform_0, window_bounds = array<i64: 16, 32>}, {pipeline_mode = #tpu.pipeline_mode<synchronous>, transform_indices = @transform_1, window_bounds = array<i64: 1, 32>}, {transform_indices = @transform_2, window_bounds = array<i64: 16, 32>}]} {
    %c0 = arith.constant 0 : index
    %c0_0 = arith.constant 0 : index
    %0 = vector.load %arg1[%c0, %c0_0] : memref<16x32xbf16, #tpu.memory_space<vmem>>, vector<16x32xbf16>
    %1 = arith.extf %0 : vector<16x32xbf16> to vector<16x32xf32>
    %2 = arith.mulf %1, %1 : vector<16x32xf32>
    %cst = arith.constant dense<0.000000e+00> : vector<16xf32>
    %3 = vector.multi_reduction <add>, %2, %cst [1] : vector<16x32xf32> to vector<16xf32>
    %4 = vector.shape_cast %3 : vector<16xf32> to vector<16x1xf32>
    %cst_1 = arith.constant 3.200000e+01 : f32
    %5 = vector.broadcast %cst_1 : f32 to vector<16x1xf32>
    %6 = arith.divf %4, %5 : vector<16x1xf32>
    %cst_2 = arith.constant 9.99999974E-6 : f32
    %7 = vector.broadcast %cst_2 : f32 to vector<16x1xf32>
    %8 = arith.addf %6, %7 : vector<16x1xf32>
    %9 = math.rsqrt %8 : vector<16x1xf32>
    %10 = vector.broadcast %9 : vector<16x1xf32> to vector<16x32xf32>
    %11 = arith.mulf %1, %10 : vector<16x32xf32>
    %c0_3 = arith.constant 0 : index
    %c0_4 = arith.constant 0 : index
    %12 = vector.load %arg2[%c0_3, %c0_4] : memref<1x32xf32, #tpu.memory_space<vmem>>, vector<1x32xf32>
    %13 = vector.broadcast %12 : vector<1x32xf32> to vector<16x32xf32>
    %14 = arith.mulf %11, %13 : vector<16x32xf32>
    %15 = arith.truncf %14 : vector<16x32xf32> to vector<16x32xbf16>
    %c0_5 = arith.constant 0 : index
    %c0_6 = arith.constant 0 : index
    %16 = vector.load %arg3[%c0_5, %c0_6] : memref<16x32xbf16, #tpu.memory_space<vmem>>, vector<16x32xbf16>
    tpu.vector_store %arg3[%c0_5, %c0_6], %15 {strides = array<i32>} : memref<16x32xbf16, #tpu.memory_space<vmem>>, vector<16x32xbf16>,
    return
  }
  func.func @transform_0(%arg0: i32) -> (i32, i32) {
    %c0_i32 = arith.constant 0 : i32
    %c0_i32_0 = arith.constant 0 : i32
    return %arg0, %c0_i32 : i32, i32
  }
  func.func @transform_1(%arg0: i32) -> (i32, i32) {
    %c0_i32 = arith.constant 0 : i32
    %c0_i32_0 = arith.constant 0 : i32
    %c0_i32_1 = arith.constant 0 : i32
    return %c0_i32, %c0_i32_0 : i32, i32
  }
  func.func @transform_2(%arg0: i32) -> (i32, i32) {
    %c0_i32 = arith.constant 0 : i32
    %c0_i32_0 = arith.constant 0 : i32
    return %arg0, %c0_i32 : i32, i32
  }
}

</mosaic_0001>

<bundles_post_ra>
// kernel: tpu_custom_call.1
= control target key start
LH: loop header
LB: loop body
LE: loop exit
PB: predicated region body
PF: predicated region fallthrough
CT: control target
= control target key end

     0   :  { %7 = vsyncpa [#allocation3], 0  ;;  %s250_s0 = inlined_call_operand.hbm [shape: bf16[16,32], index: 0, kind: input, shape index: {}]   ;;  %s251_s1 = inlined_call_operand.hbm [shape: f32[1,32], index: 1, kind: input, shape index: {}]   ;;  %s252_s2 = inlined_call_operand.hbm [shape: bf16[16,32], index: 2, kind: output, shape index: {}]  }
   0x1   :  { %8 = vsyncpa [#allocation6], 0 }
   0x2   :  { %9 = vsyncpa [#allocation4], 0  ;;  %s14_s11 = sshll.u32 %s250_s0, 4  ;;  %s214_s12 = smov [#allocation2]   ;;  %s15_s11 = int_to_ptr.hbm [resolvable:$true] %s14_s11 }
   0x3   :  { %s16_s13 = sshll.u32 %s214_s12, 4  ;;  %s28_s16 = sshll.u32 %s251_s1, 4  ;;  %s17_s13 = int_to_ptr.vmem [resolvable:$true] %s16_s13  ;;  %s29_s16 = int_to_ptr.hbm [resolvable:$true] %s28_s16 }
   0x4   :  { %s215_s17 = smov 64   ;;  %s216_s18 = smov 4  }
   0x5   :  { %22 = dma.hbm_to_vmem [thread:$0]  %s15_s11, 128, %s17_s13, [#allocation3], %s215_s17, %s215_s17, %s216_s18  }
   0x6   :  { %s217_s19 = smov [#allocation5]  }
   0x7   :  { %s30_s20 = sshll.u32 %s217_s19, 4  ;;  %s31_s20 = int_to_ptr.vmem [resolvable:$true] %s30_s20 }
   0x8   :  { %33 = dma.hbm_to_vmem [thread:$0]  %s29_s16, 16, %s31_s20, [#allocation6]  }
   0x9   :  { %208 = dma.done.wait [#allocation3], 128  }
   0xa   :  { %209 = vsyncadd [#allocation3], 4294967168 }
   0xb   :  { %210 = dma.done.wait [#allocation6], 16  }
   0xc   :  { %211 = vsyncadd [#allocation6], 4294967280  ;;  %v120_v0 = vld [vmem:[#allocation2] sm:$0xff]   ;;  %vm48_vm0 = vcmask 261120   ;;  %v218_v7 = vmov 32.0   ;;  %vm96_vm6 = vcmask 257024  }
   0xd   :  { %v121_v1 = vunpack.c.l.bf16 %v120_v0  ;;  %v122_v3 = vunpack.c.h.bf16 %v120_v0  ;;  %130 = vrcp.f32 %v218_v7  ;;  %v129_v28 = vld [vmem:[#allocation5] ss:$0 sm:$0xff]  ;;  %s219_s0 = smov [#allocation7]   ;;  %s105_s23 = sshll.u32 %s252_s2, 4  ;;  %s106_s23 = int_to_ptr.hbm [resolvable:$true] %s105_s23 }
   0xe   :  { %s103_s1 = sshll.u32 %s219_s0, 4  ;;  %s104_s1 = int_to_ptr.vmem [resolvable:$true] %s103_s1 }
   0xf   :  { %v46_v2 = vmul.f32 %v121_v1, %v121_v1  ;;  %v47_v5 = vmul.f32 %v122_v3, %v122_v3 }
  0x11   :  { %v49_v4 = vsel %vm48_vm0, %v46_v2, 0.0  ;;  %v52_v6 = vsel %vm48_vm0, %v47_v5, 0.0 }
  0x12   :  { %50 = vadd.xlane.f32.xlu0 %v49_v4 }
  0x13   :  { %v131_v8 = vpop.eup %130 }
  0x14   :  { %v56_v9 = vmul.f32 32.0, %v131_v8  ;;  %vm60_vm1 = vweird.f32 %v131_v8 }
  0x16   :  { %v57_v10 = vsub.f32 1.0, %v56_v9 }
  0x18   :  { %v58_v11 = vmul.f32 %v131_v8, %v57_v10 }
  0x1a   :  { %53 = vadd.xlane.f32.xlu0 %v52_v6  ;;  %v59_v12 = vadd.f32 %v131_v8, %v58_v11 }
  0x1c   :  { %v61_v13 = vsel %vm60_vm1, %v131_v8, %v59_v12 }
  0x85   :  { %v51_v14 = vpop.xlane.xlu0 %50 }
  0x86   :  { %v62_v15 = vmul.f32 %v61_v13, %v51_v14 }
  0x88   :  { %v64_v16 = vadd.f32 1e-05, %v62_v15 }
  0x8a   :  { %132 = vrsqrt.f32 %v64_v16  ;;  %vm72_vm3 = vweird.f32 %v64_v16 }
  0x8d   :  { %v54_v17 = vpop.xlane.xlu0 %53 }
  0x8e   :  { %v63_v18 = vmul.f32 %v61_v13, %v54_v17 }
  0x90   :  { %v133_v19 = vpop.eup %132  ;;  %v65_v20 = vadd.f32 1e-05, %v63_v18 }
  0x91   :  { %v67_v21 = vmul.f32 %v133_v19, %v64_v16  ;;  %vm73_vm2 = vweird.f32 %v133_v19 }
  0x92   :  { %134 = vrsqrt.f32 %v65_v20  ;;  %vm74_vm4 = vmor %vm72_vm3, %vm73_vm2  ;;  %vm82_vm7 = vweird.f32 %v65_v20 }
  0x93   :  { %v68_v22 = vmul.f32 %v133_v19, %v67_v21 }
  0x95   :  { %v69_v23 = vmul.f32 0.5, %v68_v22 }
  0x97   :  { %v70_v24 = vsub.f32 1.5, %v69_v23 }
  0x98   :  { %v135_v25 = vpop.eup %134 }
  0x99   :  { %v71_v26 = vmul.f32 %v133_v19, %v70_v24  ;;  %v77_v27 = vmul.f32 %v135_v25, %v65_v20  ;;  %vm83_vm5 = vweird.f32 %v135_v25 }
  0x9a   :  { %vm84_vm8 = vmor %vm82_vm7, %vm83_vm5 }
  0x9b   :  { %v75_v29 = vsel %vm74_vm4, %v133_v19, %v71_v26  ;;  %v78_v30 = vmul.f32 %v135_v25, %v77_v27 }
  0x9c   :  { %v86_v31 = vmul.f32 %v121_v1, %v75_v29 }
  0x9d   :  { %v79_v32 = vmul.f32 0.5, %v78_v30 }
  0x9e   :  { %v92_v33 = vmul.f32 %v129_v28, %v86_v31 }
  0x9f   :  { %v80_v34 = vsub.f32 1.5, %v79_v32 }
  0xa0   :  { %v94_v35 = vpack.c.bf16 %v92_v33, %v92_v33 }
  0xa1   :  { %v81_v36 = vmul.f32 %v135_v25, %v80_v34 }
  0xa2   :  { %97 = vst.msk [vmem:[#allocation7] sm:$0xf] %vm96_vm6, %v94_v35 }
  0xa3   :  { %v85_v37 = vsel %vm84_vm8, %v135_v25, %v81_v36 }
  0xa4   :  { %v87_v38 = vmul.f32 %v122_v3, %v85_v37 }
  0xa6   :  { %v93_v39 = vmul.f32 %v129_v28, %v87_v38 }
  0xa8   :  { %v95_v40 = vpack.c.bf16 %v93_v39, %v93_v39 }
  0xaa   :  { %98 = vst.msk [vmem:[#allocation7 + $0x4] sm:$0xf] %vm96_vm6, %v95_v40 }
  0xab   :  { %111 = dma.vmem_to_hbm [thread:$0]  %s104_s1, 128, %s106_s23, [#allocation4], %s215_s17, %s215_s17, %s216_s18  }
  0xac   :  { %212 = dma.done.wait [#allocation4], 128  }
  0xad   :  { %213 = vsyncadd [#allocation4], 4294967168 }
  0xae   :  { %116 = vsyncpa [#allocation3], 1 }
  0xaf   :  { %117 = vsyncpa [#allocation6], 1 }
  0xb0   :  { %118 = vsyncpa [#allocation4], 1 }

</bundles_post_ra>
